<compile_context>
chip_gen: v6e
topology: v6e:2x2x1
jax: 0.10.0
libtpu: 0.0.40
codegen_flags: <defaults>
</compile_context>

<pallas_src>
import jax
import jax.numpy as jnp
from jax.experimental import pallas as pl
from jax.experimental.pallas import tpu as pltpu


def recdr_edge_gat_kernel(bI_ref, bS_ref, eI_ref, eS_ref, invI_ref, invS_ref,
                          w1_ref, w2_ref, w3_ref, out_ref,
                          accI_ref, accS_ref):
    k = pl.program_id(1)

    # ---- init accumulators at the start of the M reduction ---------------
    @pl.when(k == 0)
    def _():
        accI_ref[...] = jnp.zeros_like(accI_ref)
        accS_ref[...] = jnp.zeros_like(accS_ref)

    # ---- sum aggregation (copy_e + sum) as tiled matmul over M -------------
    # B is the binary incidence matrix (exact in bf16); accumulate in f32.
    accI_ref[...] += jnp.dot(bI_ref[...], eI_ref[...],
                             preferred_element_type=jnp.float32)
    accS_ref[...] += jnp.dot(bS_ref[...], eS_ref[...],
                             preferred_element_type=jnp.float32)

    # ---- finalize: 1/deg scale + attention + combine + fc3 -----------------
    @pl.when(k == pl.num_programs(1) - 1)
    def _():
        # mean = sum * 1/deg, applied in f32 (exact; zero-in-degree rows -> 0)
        YI = accI_ref[...] * invI_ref[...]                     # [TN, De] f32
        YS = accS_ref[...] * invS_ref[...]

        # attention MLP: two small dots (no [2*TN, De] concat materialization)
        HI = jnp.tanh(jnp.dot(YI, w1_ref[...],
                              preferred_element_type=jnp.float32))
        HS = jnp.tanh(jnp.dot(YS, w1_ref[...],
                              preferred_element_type=jnp.float32))

        # fc2 ([De, 1] projection) as a VPU reduction, not a lane-1 matmul
        w2row = w2_ref[0:1, :]                                 # [1, De]
        lI = jnp.sum(HI * w2row, axis=-1, keepdims=True)       # [TN, 1]
        lS = jnp.sum(HS * w2row, axis=-1, keepdims=True)

        # 2-way softmax (approx reciprocal -> EUP slot, effectively free)
        m = jnp.maximum(lI, lS)
        pI = jnp.exp(lI - m)
        pS = jnp.exp(lS - m)
        inv = pl.reciprocal(pI + pS, approx=True)
        aI = pI * inv
        aS = pS * inv

        OY = aI * YI + aS * YS                                 # [TN, De]
        out_ref[...] = jnp.dot(OY, w3_ref[...],
                               preferred_element_type=jnp.float32
                               ).astype(out_ref.dtype)


def _round_up(x, m):
    return ((x + m - 1) // m) * m


def recdr_edge_gat(dst_I, dst_S, E_I, E_S, W1, W2, W3, num_nodes, *,
                   tile_n=512, tile_m=4096, mxu_dtype=jnp.bfloat16):
    """dst_*: [M_*] destination node id of each edge (per edge type).
    E_*: [M_*, De] edge features.  W1: [De, De], W2: [De, 1], W3: [De, Dn]
    (nn.Linear weights stored [in, out], bias=False).  Returns [N, Dn] f32."""
    N = int(num_nodes)
    M_I, De = E_I.shape
    M_S = E_S.shape[0]
    Dn = W3.shape[1]
    f32 = jnp.float32
    M_max = max(M_I, M_S)

    a_item = jnp.dtype(mxu_dtype).itemsize
    e_item = a_item

    # ---- tile sizing -------------------------------------------------------
    TN = min(tile_n, _round_up(N, 8))
    TM = min(tile_m, _round_up(M_max, 128))

    # v7x megacore: keep >= 2 blocks on the "parallel" i axis when N allows,
    # otherwise one TensorCore idles.
    while _round_up(N, TN) // TN < 2 and TN > 8:
        TN = max(8, _round_up(TN // 2, 8))

    # Double-buffered tile working set; keep it under ~40 MiB so the config is
    # safe on v7x (64 MiB VMEM / TC) with headroom for Mosaic scratch.
    def footprint(tn, tm):
        return (2 * 2 * tn * tm * a_item            # B_I / B_S tiles (x2 buf)
                + 2 * 2 * tm * De * e_item          # E_I / E_S tiles (x2 buf)
                + 2 * 2 * tn * 4                    # 1/deg columns
                + 2 * tn * De * 4                   # f32 accumulators
                + 2 * tn * Dn * 4                   # output block
                + 2 * (De * De + 8 * De + De * Dn) * 4)   # resident weights

    VMEM_BUDGET = 40 * 1024 * 1024
    while footprint(TN, TM) > VMEM_BUDGET and TM > 128:
        TM = max(128, _round_up(TM // 2, 128))
    while footprint(TN, TM) > VMEM_BUDGET and TN > 8:
        TN = max(8, _round_up(TN // 2, 8))

    N_p = _round_up(N, TN)
    # TODO(synk): per-relation M padding (or pl.when tail-skip) if M_I and M_S
    # are strongly imbalanced; here both pad to the same reduction extent.
    M_p = _round_up(M_max, TM)

    # ---- build operands directly in their final padded / MXU layout --------
    # A = diag(1/deg) @ B: B is binary (exact in bf16), built once at the
    # padded shape in the MXU dtype — no separate f32 A copy is materialized.
    def incidence_and_invdeg(dst, M):
        dst = dst.astype(jnp.int32)
        dst_p = jnp.full((M_p,), -1, jnp.int32).at[:M].set(dst)
        B = (dst_p[None, :] ==
             jnp.arange(N_p, dtype=jnp.int32)[:, None]).astype(mxu_dtype)
        deg = jnp.zeros((N_p,), f32).at[dst].add(1.0)
        inv = jnp.where(deg > 0, 1.0 / deg, 0.0).reshape(N_p, 1)
        return B, inv

    B_I, invI = incidence_and_invdeg(dst_I, M_I)
    B_S, invS = incidence_and_invdeg(dst_S, M_S)

    def pad2(x, rows, cols, dtype):
        if x.shape == (rows, cols) and x.dtype == dtype:
            return x
        return jnp.zeros((rows, cols), dtype).at[:x.shape[0], :x.shape[1]] \
                  .set(x.astype(dtype))

    E_Ip = pad2(E_I, M_p, De, mxu_dtype)
    E_Sp = pad2(E_S, M_p, De, mxu_dtype)
    # Feature dims stay un-padded (full-array-dim blocks are legal); the
    # kernel is HBM-byte-bound so lane-padding E/out 4x would be a net loss.
    W1p = W1.astype(f32)
    W2r = pad2(W2.T, 8, De, f32)       # fc2 weight as a sublane-padded row
    W3p = W3.astype(f32)               # TODO(synk): bf16 finalize weights on v5e

    grid = (N_p // TN, M_p // TM)
    vmem_limit = int(min(48 * 1024 * 1024,
                         max(32 * 1024 * 1024,
                             footprint(TN, TM) * 3 // 2 + (4 << 20))))

    out_p = pl.pallas_call(
        recdr_edge_gat_kernel,
        out_shape=jax.ShapeDtypeStruct((N_p, Dn), f32),
        grid_spec=pltpu.PrefetchScalarGridSpec(
            num_scalar_prefetch=0,
            grid=grid,
            in_specs=[
                pl.BlockSpec((TN, TM), lambda i, k: (i, k)),    # B_I tile
                pl.BlockSpec((TN, TM), lambda i, k: (i, k)),    # B_S tile
                pl.BlockSpec((TM, De), lambda i, k: (k, 0)),    # E_I tile
                pl.BlockSpec((TM, De), lambda i, k: (k, 0)),    # E_S tile
                pl.BlockSpec((TN, 1), lambda i, k: (i, 0)),     # 1/deg interact
                pl.BlockSpec((TN, 1), lambda i, k: (i, 0)),     # 1/deg similar
                # constant block index -> DMA'd once, resident across the grid
                pl.BlockSpec((De, De), lambda i, k: (0, 0)),    # W1
                pl.BlockSpec((8, De), lambda i, k: (0, 0)),     # W2 row
                pl.BlockSpec((De, Dn), lambda i, k: (0, 0)),    # W3
            ],
            out_specs=pl.BlockSpec((TN, Dn), lambda i, k: (i, 0)),
            scratch_shapes=[
                pltpu.VMEM((TN, De), f32),   # sum-I accumulator
                pltpu.VMEM((TN, De), f32),   # sum-S accumulator
            ],
        ),
        compiler_params=pltpu.CompilerParams(
            dimension_semantics=("parallel", "arbitrary"),
            vmem_limit_bytes=vmem_limit,
        ),
    )(B_I, B_S, E_Ip, E_Sp, invI, invS, W1p, W2r, W3p)

    return out_p[:N, :]


def _reference(dst_I, dst_S, E_I, E_S, W1, W2, W3, N):
    def mean_agg(dst, E):
        onehot = jax.nn.one_hot(dst, N, dtype=jnp.float32).T     # [N, M]
        deg = onehot.sum(axis=1, keepdims=True)
        return (onehot / jnp.maximum(deg, 1.0)) @ E
    YI = mean_agg(dst_I, E_I)
    YS = mean_agg(dst_S, E_S)
    eI = jnp.tanh(YI @ W1) @ W2
    eS = jnp.tanh(YS @ W1) @ W2
    a = jax.nn.softmax(jnp.concatenate([eI, eS], axis=1), axis=1)[:, :, None]
    OY = (a * jnp.stack([YI, YS], axis=1)).sum(axis=1)
    return OY @ W3


if __name__ == "__main__":
    # Small, forward-consistent shapes.
    N = 16          # number of nodes of ntype 'node'
    M_I = 24        # number of 'interact' edges
    M_S = 20        # number of 'similar' edges
    De = 32         # edge_embed_size
    Dn = 32         # node_embed_size

    key = jax.random.PRNGKey(0)
    k_ei, k_es, k_di, k_ds, k_w1, k_w2, k_w3 = jax.random.split(key, 7)

    # Edge features for each edge type.
    E_I = jax.random.normal(k_ei, (M_I, De), dtype=jnp.float32)
    E_S = jax.random.normal(k_es, (M_S, De), dtype=jnp.float32)

    # Deterministic synthetic graph structure: destination node of each edge.
    dst_I = jax.random.randint(k_di, (M_I,), 0, N)
    dst_S = jax.random.randint(k_ds, (M_S,), 0, N)

    # Deterministic parameter init (nn.Linear-style uniform, weights [in, out]).
    def lin_init(k, fan_in, fan_out):
        bound = 1.0 / jnp.sqrt(jnp.float32(fan_in))
        return jax.random.uniform(k, (fan_in, fan_out), jnp.float32, -bound, bound)

    W1 = lin_init(k_w1, De, De)   # fc1 (bias=False)
    W2 = lin_init(k_w2, De, 1)    # fc2 (bias=False)
    W3 = lin_init(k_w3, De, Dn)   # fc3 (bias=False)

    out = recdr_edge_gat(dst_I, dst_S, E_I, E_S, W1, W2, W3, num_nodes=N)
    out = jax.block_until_ready(out)

    # The kernel feeds E to the MXU in bf16 (the binary incidence and the f32
    # 1/deg scale are exact), so the reference uses the same bf16-rounded E;
    # everything downstream of aggregation runs in f32 in both paths.
    bf = lambda x: x.astype(jnp.bfloat16).astype(jnp.float32)
    ref = _reference(dst_I, dst_S, bf(E_I), bf(E_S), W1, W2, W3, N)

    assert out.shape == (N, Dn)
    assert jnp.allclose(out, ref, atol=2e-3, rtol=2e-3), \
        "Pallas kernel mismatch vs reference"

    print("KERNEL_OK")
</pallas_src>

<mosaic_0001>
module attributes {stable_mosaic.version = 11 : i64} {
  func.func @recdr_edge_gat_kernel(%arg0: i32, %arg1: i32, %arg2: memref<8x128xbf16, #tpu.memory_space<vmem>>, %arg3: memref<8x128xbf16, #tpu.memory_space<vmem>>, %arg4: memref<128x32xbf16, #tpu.memory_space<vmem>>, %arg5: memref<128x32xbf16, #tpu.memory_space<vmem>>, %arg6: memref<8x1xf32, #tpu.memory_space<vmem>>, %arg7: memref<8x1xf32, #tpu.memory_space<vmem>>, %arg8: memref<32x32xf32, #tpu.memory_space<vmem>>, %arg9: memref<8x32xf32, #tpu.memory_space<vmem>>, %arg10: memref<32x32xf32, #tpu.memory_space<vmem>>, %arg11: memref<8x32xf32, #tpu.memory_space<vmem>>, %arg12: memref<8x32xf32, #tpu.memory_space<vmem>>, %arg13: memref<8x32xf32, #tpu.memory_space<vmem>>) attributes {dimension_semantics = [#tpu.dimension_semantics<parallel>, #tpu.dimension_semantics<arbitrary>], iteration_bounds = array<i64: 2, 1>, scalar_prefetch = 0 : i64, scratch_operands = 2 : i64, tpu.core_type = #tpu.core_type<tc>, window_params = [{transform_indices = @transform_0, window_bounds = array<i64: 8, 128>}, {transform_indices = @transform_1, window_bounds = array<i64: 8, 128>}, {transform_indices = @transform_2, window_bounds = array<i64: 128, 32>}, {transform_indices = @transform_3, window_bounds = array<i64: 128, 32>}, {transform_indices = @transform_4, window_bounds = array<i64: 8, 1>}, {transform_indices = @transform_5, window_bounds = array<i64: 8, 1>}, {pipeline_mode = #tpu.pipeline_mode<synchronous>, transform_indices = @transform_6, window_bounds = array<i64: 32, 32>}, {pipeline_mode = #tpu.pipeline_mode<synchronous>, transform_indices = @transform_7, window_bounds = array<i64: 8, 32>}, {pipeline_mode = #tpu.pipeline_mode<synchronous>, transform_indices = @transform_8, window_bounds = array<i64: 32, 32>}, {transform_indices = @transform_9, window_bounds = array<i64: 8, 32>}]} {
    %c0_i32 = arith.constant 0 : i32
    %0 = arith.cmpi eq, %arg1, %c0_i32 : i32
    %1 = arith.extui %0 : i1 to i32
    %c0_i32_0 = arith.constant 0 : i32
    %2 = arith.cmpi ne, %1, %c0_i32_0 : i32
    scf.if %2 {
      %cst_19 = arith.constant 0.000000e+00 : f32
      %18 = vector.broadcast %cst_19 : f32 to vector<8x32xf32>
      %c0_20 = arith.constant 0 : index
      %c0_21 = arith.constant 0 : index
      %19 = vector.load %arg12[%c0_20, %c0_21] : memref<8x32xf32, #tpu.memory_space<vmem>>, vector<8x32xf32>
      tpu.vector_store %arg12[%c0_20, %c0_21], %18 {strides = array<i32>} : memref<8x32xf32, #tpu.memory_space<vmem>>, vector<8x32xf32>,
      %cst_22 = arith.constant 0.000000e+00 : f32
      %20 = vector.broadcast %cst_22 : f32 to vector<8x32xf32>
      %c0_23 = arith.constant 0 : index
      %c0_24 = arith.constant 0 : index
      %21 = vector.load %arg13[%c0_23, %c0_24] : memref<8x32xf32, #tpu.memory_space<vmem>>, vector<8x32xf32>
      tpu.vector_store %arg13[%c0_23, %c0_24], %20 {strides = array<i32>} : memref<8x32xf32, #tpu.memory_space<vmem>>, vector<8x32xf32>,
    } else {
    }
    %c0 = arith.constant 0 : index
    %c0_1 = arith.constant 0 : index
    %3 = vector.load %arg12[%c0, %c0_1] : memref<8x32xf32, #tpu.memory_space<vmem>>, vector<8x32xf32>
    %c0_2 = arith.constant 0 : index
    %c0_3 = arith.constant 0 : index
    %4 = vector.load %arg2[%c0_2, %c0_3] : memref<8x128xbf16, #tpu.memory_space<vmem>>, vector<8x128xbf16>
    %c0_4 = arith.constant 0 : index
    %c0_5 = arith.constant 0 : index
    %5 = vector.load %arg4[%c0_4, %c0_5] : memref<128x32xbf16, #tpu.memory_space<vmem>>, vector<128x32xbf16>
    %cst = arith.constant dense<0.000000e+00> : vector<8x32xf32>
    %6 = tpu.matmul %4, %5, %cst {dimension_numbers = #tpu.dot_dimension_numbers<[1], [0], [0], [1], [0, 0, 1, 1], [], []>} : vector<8x128xbf16>, vector<128x32xbf16>, vector<8x32xf32> -> vector<8x32xf32>
    %7 = arith.addf %3, %6 : vector<8x32xf32>
    %c0_6 = arith.constant 0 : index
    %c0_7 = arith.constant 0 : index
    %8 = vector.load %arg12[%c0_6, %c0_7] : memref<8x32xf32, #tpu.memory_space<vmem>>, vector<8x32xf32>
    tpu.vector_store %arg12[%c0_6, %c0_7], %7 {strides = array<i32>} : memref<8x32xf32, #tpu.memory_space<vmem>>, vector<8x32xf32>,
    %c0_8 = arith.constant 0 : index
    %c0_9 = arith.constant 0 : index
    %9 = vector.load %arg13[%c0_8, %c0_9] : memref<8x32xf32, #tpu.memory_space<vmem>>, vector<8x32xf32>
    %c0_10 = arith.constant 0 : index
    %c0_11 = arith.constant 0 : index
    %10 = vector.load %arg3[%c0_10, %c0_11] : memref<8x128xbf16, #tpu.memory_space<vmem>>, vector<8x128xbf16>
    %c0_12 = arith.constant 0 : index
    %c0_13 = arith.constant 0 : index
    %11 = vector.load %arg5[%c0_12, %c0_13] : memref<128x32xbf16, #tpu.memory_space<vmem>>, vector<128x32xbf16>
    %cst_14 = arith.constant dense<0.000000e+00> : vector<8x32xf32>
    %12 = tpu.matmul %10, %11, %cst_14 {dimension_numbers = #tpu.dot_dimension_numbers<[1], [0], [0], [1], [0, 0, 1, 1], [], []>} : vector<8x128xbf16>, vector<128x32xbf16>, vector<8x32xf32> -> vector<8x32xf32>
    %13 = arith.addf %9, %12 : vector<8x32xf32>
    %c0_15 = arith.constant 0 : index
    %c0_16 = arith.constant 0 : index
    %14 = vector.load %arg13[%c0_15, %c0_16] : memref<8x32xf32, #tpu.memory_space<vmem>>, vector<8x32xf32>
    tpu.vector_store %arg13[%c0_15, %c0_16], %13 {strides = array<i32>} : memref<8x32xf32, #tpu.memory_space<vmem>>, vector<8x32xf32>,
    %c0_i32_17 = arith.constant 0 : i32
    %15 = arith.cmpi eq, %arg1, %c0_i32_17 : i32
    %16 = arith.extui %15 : i1 to i32
    %c0_i32_18 = arith.constant 0 : i32
    %17 = arith.cmpi ne, %16, %c0_i32_18 : i32
    scf.if %17 {
      %c0_19 = arith.constant 0 : index
      %c0_20 = arith.constant 0 : index
      %18 = vector.load %arg12[%c0_19, %c0_20] : memref<8x32xf32, #tpu.memory_space<vmem>>, vector<8x32xf32>
      %c0_21 = arith.constant 0 : index
      %c0_22 = arith.constant 0 : index
      %19 = vector.load %arg6[%c0_21, %c0_22] : memref<8x1xf32, #tpu.memory_space<vmem>>, vector<8x1xf32>
      %20 = vector.broadcast %19 : vector<8x1xf32> to vector<8x32xf32>
      %21 = arith.mulf %18, %20 : vector<8x32xf32>
      %c0_23 = arith.constant 0 : index
      %c0_24 = arith.constant 0 : index
      %22 = vector.load %arg13[%c0_23, %c0_24] : memref<8x32xf32, #tpu.memory_space<vmem>>, vector<8x32xf32>
      %c0_25 = arith.constant 0 : index
      %c0_26 = arith.constant 0 : index
      %23 = vector.load %arg7[%c0_25, %c0_26] : memref<8x1xf32, #tpu.memory_space<vmem>>, vector<8x1xf32>
      %24 = vector.broadcast %23 : vector<8x1xf32> to vector<8x32xf32>
      %25 = arith.mulf %22, %24 : vector<8x32xf32>
      %c0_27 = arith.constant 0 : index
      %c0_28 = arith.constant 0 : index
      %26 = vector.load %arg8[%c0_27, %c0_28] : memref<32x32xf32, #tpu.memory_space<vmem>>, vector<32x32xf32>
      %cst_29 = arith.constant dense<0.000000e+00> : vector<8x32xf32>
      %27 = tpu.matmul %21, %26, %cst_29 {dimension_numbers = #tpu.dot_dimension_numbers<[1], [0], [0], [1], [0, 0, 1, 1], [], []>} : vector<8x32xf32>, vector<32x32xf32>, vector<8x32xf32> -> vector<8x32xf32>
      %28 = math.tanh %27 : vector<8x32xf32>
      %c0_30 = arith.constant 0 : index
      %c0_31 = arith.constant 0 : index
      %29 = vector.load %arg8[%c0_30, %c0_31] : memref<32x32xf32, #tpu.memory_space<vmem>>, vector<32x32xf32>
      %cst_32 = arith.constant dense<0.000000e+00> : vector<8x32xf32>
      %30 = tpu.matmul %25, %29, %cst_32 {dimension_numbers = #tpu.dot_dimension_numbers<[1], [0], [0], [1], [0, 0, 1, 1], [], []>} : vector<8x32xf32>, vector<32x32xf32>, vector<8x32xf32> -> vector<8x32xf32>
      %31 = math.tanh %30 : vector<8x32xf32>
      %c0_33 = arith.constant 0 : index
      %c0_34 = arith.constant 0 : index
      %32 = vector.load %arg9[%c0_33, %c0_34] : memref<8x32xf32, #tpu.memory_space<vmem>>, vector<1x32xf32>
      %33 = vector.broadcast %32 : vector<1x32xf32> to vector<8x32xf32>
      %34 = arith.mulf %28, %33 : vector<8x32xf32>
      %cst_35 = arith.constant dense<0.000000e+00> : vector<8xf32>
      %35 = vector.multi_reduction <add>, %34, %cst_35 [1] : vector<8x32xf32> to vector<8xf32>
      %36 = vector.shape_cast %35 : vector<8xf32> to vector<8x1xf32>
      %37 = vector.broadcast %32 : vector<1x32xf32> to vector<8x32xf32>
      %38 = arith.mulf %31, %37 : vector<8x32xf32>
      %cst_36 = arith.constant dense<0.000000e+00> : vector<8xf32>
      %39 = vector.multi_reduction <add>, %38, %cst_36 [1] : vector<8x32xf32> to vector<8xf32>
      %40 = vector.shape_cast %39 : vector<8xf32> to vector<8x1xf32>
      %41 = arith.maximumf %36, %40 : vector<8x1xf32>
      %42 = arith.subf %36, %41 : vector<8x1xf32>
      %43 = math.exp %42 : vector<8x1xf32>
      %44 = arith.subf %40, %41 : vector<8x1xf32>
      %45 = math.exp %44 : vector<8x1xf32>
      %46 = arith.addf %43, %45 : vector<8x1xf32>
      %47 = tpu.reciprocal %46 {approx = true} : vector<8x1xf32> -> vector<8x1xf32>
      %48 = arith.mulf %43, %47 : vector<8x1xf32>
      %49 = arith.mulf %45, %47 : vector<8x1xf32>
      %50 = vector.broadcast %48 : vector<8x1xf32> to vector<8x32xf32>
      %51 = arith.mulf %50, %21 : vector<8x32xf32>
      %52 = vector.broadcast %49 : vector<8x1xf32> to vector<8x32xf32>
      %53 = arith.mulf %52, %25 : vector<8x32xf32>
      %54 = arith.addf %51, %53 : vector<8x32xf32>
      %c0_37 = arith.constant 0 : index
      %c0_38 = arith.constant 0 : index
      %55 = vector.load %arg10[%c0_37, %c0_38] : memref<32x32xf32, #tpu.memory_space<vmem>>, vector<32x32xf32>
      %cst_39 = arith.constant dense<0.000000e+00> : vector<8x32xf32>
      %56 = tpu.matmul %54, %55, %cst_39 {dimension_numbers = #tpu.dot_dimension_numbers<[1], [0], [0], [1], [0, 0, 1, 1], [], []>} : vector<8x32xf32>, vector<32x32xf32>, vector<8x32xf32> -> vector<8x32xf32>
      %c0_40 = arith.constant 0 : index
      %c0_41 = arith.constant 0 : index
      %57 = vector.load %arg11[%c0_40, %c0_41] : memref<8x32xf32, #tpu.memory_space<vmem>>, vector<8x32xf32>
      tpu.vector_store %arg11[%c0_40, %c0_41], %56 {strides = array<i32>} : memref<8x32xf32, #tpu.memory_space<vmem>>, vector<8x32xf32>,
    } else {
    }
    return
  }
  func.func @transform_0(%arg0: i32, %arg1: i32) -> (i32, i32) {
    %c0_i32 = arith.constant 0 : i32
    return %arg0, %arg1 : i32, i32
  }
  func.func @transform_1(%arg0: i32, %arg1: i32) -> (i32, i32) {
    %c0_i32 = arith.constant 0 : i32
    return %arg0, %arg1 : i32, i32
  }
  func.func @transform_2(%arg0: i32, %arg1: i32) -> (i32, i32) {
    %c0_i32 = arith.constant 0 : i32
    %c0_i32_0 = arith.constant 0 : i32
    return %arg1, %c0_i32 : i32, i32
  }
  func.func @transform_3(%arg0: i32, %arg1: i32) -> (i32, i32) {
    %c0_i32 = arith.constant 0 : i32
    %c0_i32_0 = arith.constant 0 : i32
    return %arg1, %c0_i32 : i32, i32
  }
  func.func @transform_4(%arg0: i32, %arg1: i32) -> (i32, i32) {
    %c0_i32 = arith.constant 0 : i32
    %c0_i32_0 = arith.constant 0 : i32
    return %arg0, %c0_i32 : i32, i32
  }
  func.func @transform_5(%arg0: i32, %arg1: i32) -> (i32, i32) {
    %c0_i32 = arith.constant 0 : i32
    %c0_i32_0 = arith.constant 0 : i32
    return %arg0, %c0_i32 : i32, i32
  }
  func.func @transform_6(%arg0: i32, %arg1: i32) -> (i32, i32) {
    %c0_i32 = arith.constant 0 : i32
    %c0_i32_0 = arith.constant 0 : i32
    %c0_i32_1 = arith.constant 0 : i32
    return %c0_i32, %c0_i32_0 : i32, i32
  }
  func.func @transform_7(%arg0: i32, %arg1: i32) -> (i32, i32) {
    %c0_i32 = arith.constant 0 : i32
    %c0_i32_0 = arith.constant 0 : i32
    %c0_i32_1 = arith.constant 0 : i32
    return %c0_i32, %c0_i32_0 : i32, i32
  }
  func.func @transform_8(%arg0: i32, %arg1: i32) -> (i32, i32) {
    %c0_i32 = arith.constant 0 : i32
    %c0_i32_0 = arith.constant 0 : i32
    %c0_i32_1 = arith.constant 0 : i32
    return %c0_i32, %c0_i32_0 : i32, i32
  }
  func.func @transform_9(%arg0: i32, %arg1: i32) -> (i32, i32) {
    %c0_i32 = arith.constant 0 : i32
    %c0_i32_0 = arith.constant 0 : i32
    return %arg0, %c0_i32 : i32, i32
  }
}

</mosaic_0001>

<bundles_post_ra>
// kernel: tpu_custom_call.1
= control target key start
LH: loop header
LB: loop body
LE: loop exit
PB: predicated region body
PF: predicated region fallthrough
CT: control target
= control target key end

     0   :  { %14 = vsyncpa [#allocation5], 0  ;;  %s1719_s0 = inlined_call_operand.vmem [shape: bf16[16,128], index: 0, kind: input, shape index: {}]   ;;  %s1720_s1 = inlined_call_operand.vmem [shape: bf16[16,128], index: 1, kind: input, shape index: {}]   ;;  %s1721_s2 = inlined_call_operand.vmem [shape: bf16[128,32], index: 2, kind: input, shape index: {}]   ;;  %s1722_s3 = inlined_call_operand.vmem [shape: bf16[128,32], index: 3, kind: input, shape index: {}]   ;;  %s1723_s4 = inlined_call_operand.vmem [shape: f32[16,1], index: 4, kind: input, shape index: {}]   ;;  %s1724_s5 = inlined_call_operand.vmem [shape: f32[16,1], index: 5, kind: input, shape index: {}]   ;;  %s1725_s6 = inlined_call_operand.vmem [shape: f32[32,32], index: 6, kind: input, shape index: {}]   ;;  %s1726_s7 = inlined_call_operand.vmem [shape: f32[8,32], index: 7, kind: input, shape index: {}]   ;;  %s1727_s8 = inlined_call_operand.vmem [shape: f32[32,32], index: 8, kind: input, shape index: {}]   ;;  %s1728_s9 = inlined_call_operand.hbm [shape: f32[16,32], index: 9, kind: output, shape index: {}]  }
   0x1   :  { %16 = vsyncpa [#allocation5 + $0x1], 0  ;;  %s1470_s30 = smov 0   ;;  %s1472_s10 = smov 0  }
   0x2   :  { %s1474_s11 = smov 0   ;;  %s1476_s12 = smov 0  }
   0x3   :  { %s1478_s13 = smov 0   ;;  %s1480_s14 = smov 0  }
   0x4 LB: > { %s1111_s15 = sadd.s32 4294967295, %s1414_s14   ;;  %s1112_s16 = sadd.s32 4294967294, %s1414_s14   ;;  %s1414_s14 = sphi %s1480_s14, %s22_s14   ;;  %s1410_s13 = sphi %s1478_s13, %s1738_s13   ;;  %s1406_s12 = sphi %s1476_s12, %s1737_s12   ;;  %s1402_s11 = sphi %s1474_s11, %s1736_s11   ;;  %s1398_s10 = sphi %s1472_s10, %s1735_s10   ;;  %s1394_s30 = sphi %s1470_s30, %s1734_s30  }
   0x5   : > { %s34_s17 = sadd.s32 1, %s1410_s13  ;;  %s264_s18 = sadd.s32 1, %s1402_s11 }
   0x6   : > { %p36_p0 = scmp.ge.s32.totalorder %s34_s17, 2  ;;  %p274_p1 = scmp.ne.s32.totalorder %s1402_s11, %s1398_s10 }
   0x7   : > { %p275_p2 = scmp.eq.s32.totalorder %s1111_s15, 1  ;;  %p280_p3 = scmp.ne.s32.totalorder %s1398_s10, %s1394_s30 }
   0x8   : > { %s1740_s17 = smov (%p36_p0, %s34_s17), 0  ;;  %p281_p5 = scmp.eq.s32.totalorder %s1112_s16, 1 }
   0x9   : > { %1730 = sst [smem:[#allocation7_spill]] %s1740_s17  ;;  %p1510_p4 = por %p275_p2, %p274_p1 }
   0xa   : > { %s261_s20 = ssub.s32 %s1410_s13, %s1740_s17  ;;  %p1117_p6 = scmp.ge.s32.totalorder %s1414_s14, 1 }
   0xb   : > { %p262_p7 = scmp.eq.s32.totalorder %s261_s20, 0  ;;  %p1517_p8 = por %p281_p5, %p280_p3 }
   0xc   : > { %p360_p9 = scmp.lt.s32.totalorder %s1414_s14, 3 }
   0xd   : > { %s1523_s22 = scalar_select %p262_p7, %s1402_s11, %s264_s18  }
   0xe   : > { %p361_p10 = pnand %p1117_p6, %p360_p9 }
   0xf   : > { %p423_p11 = scmp.lt.s32.totalorder (!%p361_p10), %s1406_s12, 1  ;;  %s420_s20 = sand.u32 (!%p361_p10), 1, %s1398_s10  }
  0x10   : > { %364 = sbr.rel (%p361_p10) target bundleno = 861 (0x35d), region = 56  ;;  %s1118_s23 = sshll.u32 (!%p361_p10), %s420_s20, 3 }
  0x15   : > { %v1312_v0 = vld [vmem:[%s1721_s2 + $0x38] sm:$0xff]   ;;  %v1416_v1 = vmov 0.0   ;;  %v1314_v3 = vld [vmem:[%s1721_s2 + $0x30] sm:$0xff]   ;;  %vm1417_vm0 = vmmov 0   ;;  %v1418_v5 = vmov 0   ;;  %vm462_vm1 = vcmask 261120  }
  0x16   : > { %1180 = vmatprep.subr.bf16.mxu0 %v1416_v1  ;;  %1200 = vmatprep.subr.bf16.mxu1 %v1416_v1  ;;  %v1313_v2 = vld [vmem:[%s1722_s3 + $0x38] sm:$0xff]   ;;  %v1315_v4 = vld [vmem:[%s1722_s3 + $0x30] sm:$0xff]   ;;  %v1316_v6 = vld [vmem:[%s1721_s2 + $0x28] sm:$0xff]   ;;  %463 = vst.msk [vmem:[#allocation2] sm:$0xff] %vm462_vm1, %v1416_v1  ;;  %s1559_s24 = scalar_select %p423_p11, %s1406_s12, 1 }
  0x17   : > { %1181 = vmatpush3.bf16.msra.mxu0 %v1312_v0  ;;  %1196 = vmatprep.mubr.msk.bf16.mxu0 %vm1417_vm0, %v1416_v1  ;;  %464 = vst.msk [vmem:[#allocation3] sm:$0xff] %vm462_vm1, %v1416_v1  ;;  %v1317_v7 = vld [vmem:[%s1722_s3 + $0x28] sm:$0xff]   ;;  %v1318_v8 = vld [vmem:[%s1721_s2 + $0x20] sm:$0xff]   ;;  %v1320_v10 = vld [vmem:[%s1721_s2 + $0x18] sm:$0xff]  }
  0x18   : > { %1201 = vmatpush3.bf16.msra.mxu1 %v1313_v2  ;;  %1182 = vmatprep.subr.bf16.mxu0 %v1416_v1  ;;  %s1121_s27 = sshll.u32 %s1559_s24, 3  ;;  %v1319_v9 = vld [vmem:[%s1722_s3 + $0x20] sm:$0xff]   ;;  %v1321_v11 = vld [vmem:[%s1722_s3 + $0x18] sm:$0xff]   ;;  %v1322_v13 = vld [vmem:[%s1721_s2 + $0x10] sm:$0xff]   ;;  %s1119_s26 = sshll.u32 %s1559_s24, 2 }
  0x19   : > { %1202 = vmatprep.subr.bf16.mxu1 %v1416_v1  ;;  %1216 = vmatprep.mubr.msk.bf16.mxu1 %vm1417_vm0, %v1416_v1  ;;  %s452_s18 = scalar_lea.vmem %s1723_s4, %s1121_s27  ;;  %s456_s17 = scalar_lea.vmem %s1724_s5, %s1121_s27  ;;  %v1323_v15 = vld [vmem:[%s1722_s3 + $0x10] sm:$0xff]   ;;  %v1324_v16 = vld [vmem:[%s1721_s2 + $0x8] sm:$0xff]   ;;  %v1326_v18 = vld [vmem:[%s1721_s2] sm:$0xff]  }
  0x1a   : > { %1311 = vset.pattern.permute.xlu0 %v1418_v5  ;;  %v686_v12 = vld [vmem:[%s452_s18] sm:$0xff]  ;;  %v1325_v17 = vld [vmem:[%s1722_s3 + $0x8] sm:$0xff]   ;;  %s429_s27 = scalar_lea.vmem %s1719_s0, %s1119_s26  ;;  %s436_s25 = scalar_lea.vmem %s1720_s1, %s1119_s26  ;;  %v704_v22 = vld [vmem:[%s1725_s6 + $0x18] sm:$0xff] }
  0x1b   : > { %1183 = vmatpush3.bf16.msra.mxu0 %v1314_v3  ;;  %689 = vperm.xlu0 %1311, %v686_v12   ;;  %v694_v14 = vld [vmem:[%s456_s17] sm:$0xff]  ;;  %v703_v23 = vld [vmem:[%s1725_s6 + $0x10] sm:$0xff]  ;;  %v702_v24 = vld [vmem:[%s1725_s6 + $0x8] sm:$0xff]  ;;  %s422_s18 = scalar_lea.vmem [#allocation4], %s1118_s23  ;;  %s959_s26 = scalar_lea.sflag [#allocation5], %s420_s20 }
  0x1c   : > { %1203 = vmatpush3.bf16.msra.mxu1 %v1315_v4  ;;  %1184 = vmatprep.subr.bf16.mxu0 %v1416_v1  ;;  %v1327_v19 = vld [vmem:[%s1722_s3] sm:$0xff]   ;;  %v883_v55 = vld [vmem:[%s1727_s8 + $0x18] sm:$0xff]  ;;  %v882_v56 = vld [vmem:[%s1727_s8 + $0x10] sm:$0xff]  ;;  %s972_s24 = sshll.u32 %s422_s18, 4  ;;  %s1674_s24 = int_to_ptr.vmem [resolvable:$true] %s972_s24 }
  0x1d   : > { %1204 = vmatprep.subr.bf16.mxu1 %v1416_v1  ;;  %v466_v20 = vld [vmem:[%s429_s27] sm:$0xf]  ;;  %v881_v57 = vld [vmem:[%s1727_s8 + $0x8] sm:$0xff]  ;;  %s1144_s27 = sshll.u32 %s1406_s12, 7  ;;  %s1338_s29 = scalar_lea.vmem %s1674_s24, 128 }
  0x1e   : > { %v575_v21 = vld [vmem:[%s436_s25] sm:$0xf]  ;;  %v574_v27 = vld [vmem:[#allocation3] sm:$0xff]  ;;  %s1672_s28 = scalar_lea.hbm %s1728_s9, %s1144_s27  ;;  %p1339_p12 = scmp.ne.s32.totalorder %s1674_s24, %s1338_s29 }
  0x1f   : > { %1185 = vmatpush3.bf16.msra.mxu0 %v1316_v6  ;;  %697 = vperm.xlu0 %1311, %v694_v14   ;;  %v701_v25 = vld [vmem:[%s1725_s6] sm:$0xff]  ;;  %s1419_s12 = smov [#allocation4]  }
  0x20   : > { %1205 = vmatpush3.bf16.msra.mxu1 %v1317_v7  ;;  %1186 = vmatprep.subr.bf16.mxu0 %v1416_v1  ;;  %v465_v26 = vld [vmem:[#allocation2] sm:$0xff]  ;;  %p1340_p13 = pnand %p1339_p12, %p1510_p4  ;;  %s1342_s15 = sshll.u32 %s1419_s12, 4  ;;  %s1343_s15 = int_to_ptr.vmem [resolvable:$false] %s1342_s15 }
  0x21   : > { %1206 = vmatprep.subr.bf16.mxu1 %v1416_v1  ;;  %v1141_v48 = vld [vmem:[%s1726_s7] ss:$0 sm:$0xff]  ;;  %s1344_s16 = scalar_lea.vmem %s1343_s15, 256  ;;  %p1345_p1 = scmp.lt.s32.totalorder %s1674_s24, %s1343_s15 }
  0x22   : > { %v880_v58 = vld [vmem:[%s1727_s8] sm:$0xff]  ;;  %p1341_p0 = pneg %p1340_p13  ;;  %p1346_p2 = scmp.lt.s32.totalorder %s1344_s16, %s1338_s29 }
  0x23   : > { %1187 = vmatpush3.bf16.msra.mxu0 %v1318_v8 }
  0x24   : > { %1207 = vmatpush3.bf16.msra.mxu1 %v1319_v9  ;;  %1188 = vmatprep.subr.bf16.mxu0 %v1416_v1  ;;  %p1347_p3 = por %p1346_p2, %p1345_p1 }
  0x25   : > { %1208 = vmatprep.subr.bf16.mxu1 %v1416_v1 }
  0x26   : > { %p1348_p5 = pnand %p1347_p3, %p1341_p0 }
  0x27   : > { %1189 = vmatpush3.bf16.msra.mxu0 %v1320_v10 }
  0x28   : > { %1209 = vmatpush3.bf16.msra.mxu1 %v1321_v11  ;;  %1190 = vmatprep.subr.bf16.mxu0 %v1416_v1 }
  0x29   : > { %1210 = vmatprep.subr.bf16.mxu1 %v1416_v1 }
  0x2b   : > { %1191 = vmatpush3.bf16.msra.mxu0 %v1322_v13 }
  0x2c   : > { %1211 = vmatpush3.bf16.msra.mxu1 %v1323_v15  ;;  %1192 = vmatprep.subr.bf16.mxu0 %v1416_v1 }
  0x2d   : > { %1212 = vmatprep.subr.bf16.mxu1 %v1416_v1 }
  0x2f   : > { %1193 = vmatpush3.bf16.msra.mxu0 %v1324_v16 }
  0x30   : > { %1213 = vmatpush3.bf16.msra.mxu1 %v1325_v17  ;;  %1194 = vmatprep.subr.bf16.mxu0 %v1416_v1 }
  0x31   : > { %1214 = vmatprep.subr.bf16.mxu1 %v1416_v1 }
  0x33   : > { %1195 = vmatpush3.bf16.msra.mxu0 %v1326_v18 }
  0x34   : > { %1215 = vmatpush3.bf16.msra.mxu1 %v1327_v19  ;;  %1220 = vmatprep.subr.mxu0 %v1416_v1 }
  0x35   : > { %1231 = vmatprep.subr.mxu1 %v1416_v1 }
  0x36   : > { %1197 = vmatmul.mubr.bf16.vlgmr.msra.gmra.mxu0 %v466_v20 }
  0x37   : > { %1217 = vmatmul.mubr.bf16.vlgmr.msra.gmra.mxu1 %v575_v21  ;;  %1228 = vmatprep.mubr.msk.f32.mxu0 %vm1417_vm0, %v1416_v1 }
  0x38   : > { %1239 = vmatprep.mubr.msk.f32.mxu1 %vm1417_vm0, %v1416_v1  ;;  %1221 = vmatpush3.msra.mxu0 %v704_v22 }
  0x39   : > { %1232 = vmatpush3.msra.mxu1 %v704_v22  ;;  %1222 = vmatprep.subr.mxu0 %v1416_v1 }
  0x3a   : > { %1233 = vmatprep.subr.mxu1 %v1416_v1  ;;  %1223 = vmatpush3.msra.mxu0 %v703_v23 }
  0x3b   : > { %1234 = vmatpush3.msra.mxu1 %v703_v23  ;;  %1224 = vmatprep.subr.mxu0 %v1416_v1 }
  0x3c   : > { %1235 = vmatprep.subr.mxu1 %v1416_v1  ;;  %1225 = vmatpush3.msra.mxu0 %v702_v24 }
  0x3d   : > { %1236 = vmatpush3.msra.mxu1 %v702_v24  ;;  %1226 = vmatprep.subr.mxu0 %v1416_v1 }
  0x3e   : > { %1237 = vmatprep.subr.mxu1 %v1416_v1  ;;  %1227 = vmatpush3.msra.mxu0 %v701_v25 }
  0x3f   : > { %1238 = vmatpush3.msra.mxu1 %v701_v25  ;;  %1242 = vmatprep.subr.mxu0 %v1416_v1 }
  0x96   : > { %v690_v34 = vpop.permute.xlu0 %689 }
  0x9a   : > { %v698_v39 = vpop.permute.xlu0 %697 }
  0xf6   : > { %v565_v28 = vpop.f32.mrf.mxu0 }
  0xf7   : > { %v571_v29 = vadd.f32 %v565_v28, %v465_v26  ;;  %v674_v30 = vpop.f32.mrf.mxu1 }
  0xf8   : > { %v680_v31 = vadd.f32 %v674_v30, %v574_v27  ;;  %v1198_v32 = vpop.f32.mrf.mxu0 }
  0xf9   : > { %573 = vst.msk [vmem:[#allocation2] sm:$0xff] %vm462_vm1, %v571_v29  ;;  %v1218_v33 = vpop.f32.mrf.mxu1 }
  0xfa   : > { %681 = vst.msk [vmem:[#allocation3] sm:$0xff] %vm462_vm1, %v680_v31  ;;  %v568_v35 = vpop.f32.mrf.mxu0 }
  0xfb   : > { %v677_v36 = vpop.f32.mrf.mxu1 }
  0xfc   : > { %v1199_v37 = vpop.f32.mrf.mxu0 }
  0xfd   : > { %v1219_v38 = vpop.f32.mrf.mxu1 }
 0x100   : > { %v685_v40 = vld [vmem:[#allocation2] sm:$0xff] }
 0x101   : > { %v692_v41 = vmul.f32 %v690_v34, %v685_v40  ;;  %v693_v42 = vld [vmem:[#allocation3] sm:$0xff] }
 0x102   : > { %v700_v43 = vmul.f32 %v698_v39, %v693_v42 }
 0x103   : > { %1229 = vmatmul.mubr.msk.f32.vlgmr.msra.gmra.mxu0 %vm462_vm1, %v692_v41 }
 0x104   : > { %1240 = vmatmul.mubr.msk.f32.vlgmr.msra.gmra.mxu1 %vm462_vm1, %v700_v43  ;;  %1250 = vmatprep.mubr.msk.f32.mxu0 %vm1417_vm0, %v1416_v1 }
 0x105   : > { %1243 = vmatpush3.msra.mxu0 %v883_v55 }
 0x106   : > { %1244 = vmatprep.subr.mxu0 %v1416_v1 }
 0x107   : > { %1245 = vmatpush3.msra.mxu0 %v882_v56 }
 0x108   : > { %1246 = vmatprep.subr.mxu0 %v1416_v1 }
 0x109   : > { %1247 = vmatpush3.msra.mxu0 %v881_v57 }
 0x10a   : > { %1248 = vmatprep.subr.mxu0 %v1416_v1 }
 0x10b   : > { %1249 = vmatpush3.msra.mxu0 %v880_v58 }
 0x1c3   : > { %v774_v44 = vpop.f32.mrf.mxu0 }
 0x1c4   : > { %1328 = vtanh.f32 %v774_v44  ;;  %v848_v45 = vpop.f32.mrf.mxu1 }
 0x1c5   : > { %1330 = vtanh.f32 %v848_v45  ;;  %v1230_v46 = vpop.f32.mrf.mxu0 }
 0x1c6   : > { %v1241_v47 = vpop.f32.mrf.mxu1 }
 0x1d1   : > { %v1329_v49 = vpop.eup %1328 }
 0x1d2   : > { %v1331_v50 = vpop.eup %1330  ;;  %v858_v51 = vmul.f32 %v1329_v49, %v1141_v48 }
 0x1d3   : > { %v862_v53 = vmul.f32 %v1331_v50, %v1141_v48 }
 0x1d4   : > { %v859_v52 = vsel %vm462_vm1, %v858_v51, 0.0 }
 0x1d5   : > { %860 = vadd.xlane.f32.xlu1 %v859_v52  ;;  %v863_v54 = vsel %vm462_vm1, %v862_v53, 0.0 }
 0x1d9   : > { %864 = vadd.xlane.f32.xlu1 %v863_v54 }
 0x25e   : > { %v861_v59 = vpop.xlane.xlu1 %860 }
 0x262   : > { %v865_v60 = vpop.xlane.xlu1 %864 }
 0x263   : > { %v866_v61 = vmax.f32 %v861_v59, %v865_v60 }
 0x265   : > { %v867_v62 = vsub.f32 %v861_v59, %v866_v61  ;;  %v870_v63 = vsub.f32 %v865_v60, %v866_v61 }
 0x267   : > { %v868_v0 = vmul.f32 1.442695, %v867_v62  ;;  %v871_v2 = vmul.f32 1.442695, %v870_v63 }
 0x269   : > { %1332 = vpow2.f32 %v868_v0 }
 0x26a   : > { %1334 = vpow2.f32 %v871_v2 }
 0x276   : > { %v1333_v3 = vpop.eup %1332 }
 0x277   : > { %v1335_v4 = vpop.eup %1334 }
 0x278   : > { %v873_v5 = vadd.f32 %v1335_v4, %v1333_v3 }
 0x27a   : > { %1336 = vrcp.f32 %v873_v5 }
 0x287   : > { %v1337_v6 = vpop.eup %1336 }
 0x288   : > { %v876_v7 = vmul.f32 %v1337_v6, %v1335_v4  ;;  %v875_v8 = vmul.f32 %v1337_v6, %v1333_v3 }
 0x28a   : > { %v877_v1 = vmul.f32 %v875_v8, %v692_v41  ;;  %v878_v9 = vmul.f32 %v876_v7, %v700_v43 }
 0x28c   : > { %v879_v10 = vadd.f32 %v878_v9, %v877_v1 }
 0x28e   : > { %1251 = vmatmul.mubr.msk.f32.vlgmr.msra.gmra.mxu0 %vm462_vm1, %v879_v10 }
 0x34e   : > { %v953_v11 = vpop.f32.mrf.mxu0 }
 0x34f   : > { %957 = vst.msk [vmem:[%s422_s18] sm:$0xff] %vm462_vm1, %v953_v11 }
 0x350   : > { %v1252_v12 = vpop.f32.mrf.mxu0 }
 0x351   : > { %1351 = shalt.err (!%p1348_p5)
}
 0x352   : > { %s1352_s23 = scalar_lea.hbm %s1672_s28, 128  ;;  %s1356_s18 = scalar_lea.hbm %s1728_s9, 256 }
 0x353   : > { %p1353_p6 = scmp.ne.s32.totalorder %s1672_s28, %s1352_s23  ;;  %p1357_p10 = scmp.lt.s32.totalorder %s1672_s28, %s1728_s9 }
 0x354   : > { %p1358_p11 = scmp.lt.s32.totalorder %s1356_s18, %s1352_s23 }
 0x355   : > { %p1354_p7 = pnand %p1353_p6, %p1510_p4 }
 0x356   : > { %p1359_p12 = por %p1358_p11, %p1357_p10 }
 0x357   : > { %p1355_p9 = pneg %p1354_p7 }
 0x359   : > { %p1360_p13 = pnand %p1359_p12, %p1355_p9 }
 0x35b   : > { %1363 = shalt.err (!%p1360_p13)
}
 0x35c   : > { %1253 = dma.vmem_to_hbm [thread:$0]  (%p1510_p4), %s1674_s24, 128, %s1672_s28, %s959_s26  }
 0x35d PF: > { %p1259_p0 = scmp.ge.s32.totalorder %s1414_s14, 2  ;;  %s984_s29 = sand.u32 1, %s1394_s30  }
 0x35e   : > { %s985_s12 = scalar_lea.sflag [#allocation5], %s984_s29 }
 0x35f   : > { %p1256_p1 = pnand %p1259_p0, %p1517_p8 }
 0x361   : > { %p1257_p2 = pneg %p1256_p1 }
 0x363   : > { %1389 = dma.done.wait (%p1257_p2), %s985_s12, 128  }
 0x364   : > { %1391 = vsyncadd (%p1257_p2), %s985_s12, 4294967168  ;;  %s22_s14 = sadd.s32 1, %s1414_s14   ;;  %s1733_s19 = sld [smem:[#allocation7_spill]] }
 0x365   : > { %p19_p3 = scmp.ge.s32.totalorder %s22_s14, 4   ;;  %s1734_s30 = smov %s1398_s10 }
 0x366   : > { %s1735_s10 = smov %s1402_s11  ;;  %s1736_s11 = smov %s1523_s22 }
 0x367   : > { %s1737_s12 = smov %s1410_s13  ;;  %21 = sbr.rel (!%p19_p3) target bundleno = 4 (0x4), region = 114 }
 0x36a   : > { %s1738_s13 = smov %s1733_s19 }
 0x36c   :  { %990 = vsyncpa [#allocation5], 1 }
 0x36d   :  { %992 = vsyncpa [#allocation5 + $0x1], 1 }

</bundles_post_ra>
